<compile_context>
chip_gen: v7x
topology: tpu7x:2x2x1
jax: 0.10.0
libtpu: 0.0.40
codegen_flags: <defaults>
</compile_context>

<pallas_src>
import functools

import jax
import jax.numpy as jnp
from jax import lax
from jax.experimental import pallas as pl
from jax.experimental.pallas import tpu as pltpu


def _round_up(v, m):
    return ((v + m - 1) // m) * m


def _slab_layout(hidden_dim, latent_dim, edge_attr_dim):
    """Static row/col offsets of the packed parameter slab (one VMEM input)."""
    H, L, A = hidden_dim, latent_dim, edge_attr_dim
    head_w = _round_up(2 * L, 128)                 # lane-dense packed mu|logvar width
    width = max(_round_up(4 * H, 128), head_w)     # slab lane width (multiple of 128)
    o_we = 0                                       # rows [A, :2H]   = we1 | we2
    o_wa = _round_up(o_we + A, 8)                  # rows [H, :4H]   = w1a | w2a
    o_wb = _round_up(o_wa + H, 8)                  # rows [2H, :2H]  = w1b | w2b
    o_wh = _round_up(o_wb + 2 * H, 8)              # rows [H, :head_w] = wmu | wlv | 0
    o_b = _round_up(o_wh + H, 8)                   # 4 bias rows
    rows = _round_up(o_b + 4, 8)
    return dict(head_w=head_w, width=width, o_we=o_we, o_wa=o_wa,
                o_wb=o_wb, o_wh=o_wh, o_b=o_b, rows=rows)


def pack_params(p, hidden_dim, latent_dim, edge_attr_dim):
    """Pack all parameters into one f32 slab + a (2,) eps vector (done once, host-side)."""
    H, L, A = hidden_dim, latent_dim, edge_attr_dim
    lay = _slab_layout(H, L, A)
    slab = jnp.zeros((lay["rows"], lay["width"]), jnp.float32)
    slab = slab.at[lay["o_we"]:lay["o_we"] + A, 0:2 * H].set(
        jnp.concatenate([p["we1"], p["we2"]], axis=1))
    slab = slab.at[lay["o_wa"]:lay["o_wa"] + H, 0:4 * H].set(
        jnp.concatenate([p["w1a"], p["w2a"]], axis=1))
    slab = slab.at[lay["o_wb"]:lay["o_wb"] + 2 * H, 0:2 * H].set(
        jnp.concatenate([p["w1b"], p["w2b"]], axis=1))
    slab = slab.at[lay["o_wh"]:lay["o_wh"] + H, 0:2 * L].set(
        jnp.concatenate([p["wmu"], p["wlv"]], axis=1))
    ob = lay["o_b"]
    slab = slab.at[ob + 0, 0:2 * H].set(jnp.concatenate([p["be1"], p["be2"]], axis=1)[0])
    slab = slab.at[ob + 1, 0:4 * H].set(jnp.concatenate([p["b1a"], p["b2a"]], axis=1)[0])
    slab = slab.at[ob + 2, 0:2 * H].set(jnp.concatenate([p["b1b"], p["b2b"]], axis=1)[0])
    slab = slab.at[ob + 3, 0:2 * L].set(jnp.concatenate([p["bmu"], p["blv"]], axis=1)[0])
    eps = jnp.concatenate(
        [p["eps1"].reshape(1), p["eps2"].reshape(1)]).astype(jnp.float32)
    return slab, eps


def vgae_encoder_kernel(x_ref, ea_ref, sd_ref, p_ref, eps_ref, out_ref,
                        *, hidden_dim, latent_dim, edge_attr_dim, layout):
    H, A = hidden_dim, edge_attr_dim
    o_we, o_wa, o_wb, o_wh, o_b = (layout["o_we"], layout["o_wa"], layout["o_wb"],
                                   layout["o_wh"], layout["o_b"])
    head_w = layout["head_w"]

    S = sd_ref[0]                                   # [E, N] one-hot(src)  (gather operator)
    D = sd_ref[1]                                   # [E, N] one-hot(dst)  (scatter operator)
    ea = ea_ref[...]                                # [E, A]

    # Fused edge encoders for both GIN layers: one [E, 2H] matmul + bias.
    we = p_ref[o_we:o_we + A, 0:2 * H]              # [A, 2H] = we1 | we2
    be = p_ref[o_b:o_b + 1, 0:2 * H]                # [1, 2H] = be1 | be2
    emb = jnp.dot(ea, we, preferred_element_type=jnp.float32) + be      # [E, 2H]

    def gin_layer(h, emb_l, eps, wa, ba, wb, bb):
        # gather x[src] via one-hot matmul (MXU)
        x_src = jnp.dot(S, h, preferred_element_type=jnp.float32)       # [E, H]
        msg = jnp.maximum(x_src + emb_l, 0.0)                           # relu message
        # scatter-add over destinations: contract the edge axis (== D^T @ msg, no DT input)
        aggr = lax.dot_general(D, msg, (((0,), (0,)), ((), ())),
                               preferred_element_type=jnp.float32)      # [N, H]
        z = (1.0 + eps) * h + aggr
        # GIN MLP: Linear(H, 2H) -> ReLU -> Linear(2H, H)
        z1 = jnp.maximum(jnp.dot(z, wa, preferred_element_type=jnp.float32) + ba, 0.0)
        z2 = jnp.dot(z1, wb, preferred_element_type=jnp.float32) + bb
        # leaky_relu(conv_out, 0.1) from the encoder's forward
        return jnp.where(z2 > 0, z2, 0.1 * z2)

    h = x_ref[...]
    h = gin_layer(
        h, emb[:, 0:H], eps_ref[0],
        p_ref[o_wa:o_wa + H, 0:2 * H], p_ref[o_b + 1:o_b + 2, 0:2 * H],
        p_ref[o_wb:o_wb + 2 * H, 0:H], p_ref[o_b + 2:o_b + 3, 0:H],
    )
    # dropout (eval mode) == identity
    h = gin_layer(
        h, emb[:, H:2 * H], eps_ref[1],
        p_ref[o_wa:o_wa + H, 2 * H:4 * H], p_ref[o_b + 1:o_b + 2, 2 * H:4 * H],
        p_ref[o_wb:o_wb + 2 * H, H:2 * H], p_ref[o_b + 2:o_b + 3, H:2 * H],
    )
    # dropout (eval mode) == identity

    # Fused, lane-dense head: [N, head_w] = [mu | logvar | 0-pad], one unmasked store.
    whead = p_ref[o_wh:o_wh + H, 0:head_w]
    bhead = p_ref[o_b + 3:o_b + 4, 0:head_w]
    out_ref[...] = jnp.dot(h, whead, preferred_element_type=jnp.float32) + bhead


def vgae_encoder_forward(x, edge_index, edge_attr, param_slab, eps,
                         *, hidden_dim, latent_dim, edge_attr_dim):
    """x: [N, H] f32, edge_index: [2, E] i32, edge_attr: [E, A] f32."""
    n_nodes = x.shape[0]
    lay = _slab_layout(hidden_dim, latent_dim, edge_attr_dim)

    src, dst = edge_index[0], edge_index[1]
    # Dense one-hot gather / scatter operators, stacked into one input (glue, plain JAX).
    S = jax.nn.one_hot(src, n_nodes, dtype=jnp.float32)        # [E, N]
    D = jax.nn.one_hot(dst, n_nodes, dtype=jnp.float32)        # [E, N]
    sd = jnp.stack([S, D], axis=0)                             # [2, E, N]

    kernel = functools.partial(
        vgae_encoder_kernel,
        hidden_dim=hidden_dim, latent_dim=latent_dim,
        edge_attr_dim=edge_attr_dim, layout=lay)

    vmem = pl.BlockSpec(memory_space=pltpu.MemorySpace.VMEM)
    smem = pl.BlockSpec(memory_space=pltpu.MemorySpace.SMEM)

    out = pl.pallas_call(
        kernel,
        out_shape=jax.ShapeDtypeStruct((n_nodes, lay["head_w"]), jnp.float32),
        in_specs=[vmem, vmem, vmem, vmem, smem],
        out_specs=vmem,
    )(x, edge_attr, sd, param_slab, eps)

    mu = out[:, 0:latent_dim]
    logvar = out[:, latent_dim:2 * latent_dim]
    return mu, logvar


def init_params(key, hidden_dim, latent_dim, edge_attr_dim):
    ks = jax.random.split(key, 16)
    s = 0.1

    def w(k, shape):
        return (s * jax.random.normal(k, shape)).astype(jnp.float32)

    return {
        # GIN layer 1
        "we1": w(ks[0], (edge_attr_dim, hidden_dim)),
        "be1": w(ks[1], (1, hidden_dim)),
        "eps1": jnp.zeros((1, 1), jnp.float32),
        "w1a": w(ks[2], (hidden_dim, 2 * hidden_dim)),
        "b1a": w(ks[3], (1, 2 * hidden_dim)),
        "w1b": w(ks[4], (2 * hidden_dim, hidden_dim)),
        "b1b": w(ks[5], (1, hidden_dim)),
        # GIN layer 2
        "we2": w(ks[6], (edge_attr_dim, hidden_dim)),
        "be2": w(ks[7], (1, hidden_dim)),
        "eps2": jnp.zeros((1, 1), jnp.float32),
        "w2a": w(ks[8], (hidden_dim, 2 * hidden_dim)),
        "b2a": w(ks[9], (1, 2 * hidden_dim)),
        "w2b": w(ks[10], (2 * hidden_dim, hidden_dim)),
        "b2b": w(ks[11], (1, hidden_dim)),
        # mu / logvar heads
        "wmu": w(ks[12], (hidden_dim, latent_dim)),
        "bmu": w(ks[13], (1, latent_dim)),
        "wlv": w(ks[14], (hidden_dim, latent_dim)),
        "blv": w(ks[15], (1, latent_dim)),
    }


def _reference(x, edge_index, edge_attr, p):
    """Pure-JAX reference (for sanity check)."""
    src, dst = edge_index[0], edge_index[1]
    n = x.shape[0]

    def gin(h, we, be, eps, wa, ba, wb, bb):
        emb = edge_attr @ we + be
        msg = jnp.maximum(h[src] + emb, 0.0)
        aggr = jnp.zeros((n, h.shape[1]), jnp.float32).at[dst].add(msg)
        z = (1.0 + eps[0, 0]) * h + aggr
        z = jnp.maximum(z @ wa + ba, 0.0) @ wb + bb
        return jnp.where(z > 0, z, 0.1 * z)

    h = gin(x, p["we1"], p["be1"], p["eps1"], p["w1a"], p["b1a"], p["w1b"], p["b1b"])
    h = gin(h, p["we2"], p["be2"], p["eps2"], p["w2a"], p["b2a"], p["w2b"], p["b2b"])
    return h @ p["wmu"] + p["bmu"], h @ p["wlv"] + p["blv"]


if __name__ == "__main__":
    # Small, deterministic problem: in_channels == hidden_dim (GINConv keeps width).
    N_NODES = 8
    N_EDGES = 16
    HIDDEN = 32
    LATENT = 16
    EDGE_ATTR_DIM = 4

    key = jax.random.PRNGKey(0)
    k_x, k_ei, k_ea, k_p = jax.random.split(key, 4)

    x = jax.random.normal(k_x, (N_NODES, HIDDEN), dtype=jnp.float32)
    edge_index = jax.random.randint(k_ei, (2, N_EDGES), 0, N_NODES, dtype=jnp.int32)
    edge_attr = jax.random.normal(k_ea, (N_EDGES, EDGE_ATTR_DIM), dtype=jnp.float32)
    params = init_params(k_p, HIDDEN, LATENT, EDGE_ATTR_DIM)

    # Pack all parameters once into a single VMEM slab + SMEM eps vector.
    slab, eps = pack_params(params, HIDDEN, LATENT, EDGE_ATTR_DIM)

    fwd = jax.jit(functools.partial(
        vgae_encoder_forward,
        hidden_dim=HIDDEN, latent_dim=LATENT, edge_attr_dim=EDGE_ATTR_DIM))
    mu, logvar = fwd(x, edge_index, edge_attr, slab, eps)
    jax.block_until_ready((mu, logvar))

    # sanity check vs. pure-JAX reference
    mu_ref, lv_ref = _reference(x, edge_index, edge_attr, params)
    assert jnp.allclose(mu, mu_ref, atol=1e-4, rtol=1e-4)
    assert jnp.allclose(logvar, lv_ref, atol=1e-4, rtol=1e-4)

    print("KERNEL_OK")
</pallas_src>

<mosaic_0001>
module attributes {stable_mosaic.version = 11 : i64} {
  func.func @vgae_encoder_kernel(%arg0: memref<8x32xf32, #tpu.memory_space<vmem>>, %arg1: memref<16x4xf32, #tpu.memory_space<vmem>>, %arg2: memref<2x16x8xf32, #tpu.memory_space<vmem>>, %arg3: memref<144x128xf32, #tpu.memory_space<vmem>>, %arg4: memref<2xf32, #tpu.memory_space<smem>>, %arg5: memref<8x128xf32, #tpu.memory_space<vmem>>) attributes {dimension_semantics = [], scalar_prefetch = 0 : i64, scratch_operands = 0 : i64, tpu.core_type = #tpu.core_type<tc>} {
    %c0 = arith.constant 0 : index
    %c0_0 = arith.constant 0 : index
    %c0_1 = arith.constant 0 : index
    %0 = vector.load %arg2[%c0, %c0_0, %c0_1] : memref<2x16x8xf32, #tpu.memory_space<vmem>>, vector<1x16x8xf32>
    %1 = vector.shape_cast %0 : vector<1x16x8xf32> to vector<16x8xf32>
    %c1 = arith.constant 1 : index
    %c0_2 = arith.constant 0 : index
    %c0_3 = arith.constant 0 : index
    %2 = vector.load %arg2[%c1, %c0_2, %c0_3] : memref<2x16x8xf32, #tpu.memory_space<vmem>>, vector<1x16x8xf32>
    %3 = vector.shape_cast %2 : vector<1x16x8xf32> to vector<16x8xf32>
    %c0_4 = arith.constant 0 : index
    %c0_5 = arith.constant 0 : index
    %4 = vector.load %arg1[%c0_4, %c0_5] : memref<16x4xf32, #tpu.memory_space<vmem>>, vector<16x4xf32>
    %c0_6 = arith.constant 0 : index
    %c0_7 = arith.constant 0 : index
    %5 = vector.load %arg3[%c0_6, %c0_7] : memref<144x128xf32, #tpu.memory_space<vmem>>, vector<4x64xf32>
    %c136 = arith.constant 136 : index
    %c0_8 = arith.constant 0 : index
    %6 = vector.load %arg3[%c136, %c0_8] : memref<144x128xf32, #tpu.memory_space<vmem>>, vector<1x64xf32>
    %cst = arith.constant dense<0.000000e+00> : vector<16x64xf32>
    %7 = tpu.matmul %4, %5, %cst {dimension_numbers = #tpu.dot_dimension_numbers<[1], [0], [0], [1], [0, 0, 1, 1], [], []>} : vector<16x4xf32>, vector<4x64xf32>, vector<16x64xf32> -> vector<16x64xf32>
    %8 = vector.broadcast %6 : vector<1x64xf32> to vector<16x64xf32>
    %9 = arith.addf %7, %8 : vector<16x64xf32>
    %c0_9 = arith.constant 0 : index
    %c0_10 = arith.constant 0 : index
    %10 = vector.load %arg0[%c0_9, %c0_10] : memref<8x32xf32, #tpu.memory_space<vmem>>, vector<8x32xf32>
    %11 = vector.extract_strided_slice %9 {offsets = [0, 0], sizes = [16, 32], strides = [1, 1]} : vector<16x64xf32> to vector<16x32xf32>
    %c0_11 = arith.constant 0 : index
    %12 = memref.load %arg4[%c0_11] : memref<2xf32, #tpu.memory_space<smem>>
    %c8 = arith.constant 8 : index
    %c0_12 = arith.constant 0 : index
    %13 = vector.load %arg3[%c8, %c0_12] : memref<144x128xf32, #tpu.memory_space<vmem>>, vector<32x64xf32>
    %c137 = arith.constant 137 : index
    %c0_13 = arith.constant 0 : index
    %14 = vector.load %arg3[%c137, %c0_13] : memref<144x128xf32, #tpu.memory_space<vmem>>, vector<1x64xf32>
    %c40 = arith.constant 40 : index
    %c0_14 = arith.constant 0 : index
    %15 = vector.load %arg3[%c40, %c0_14] : memref<144x128xf32, #tpu.memory_space<vmem>>, vector<64x32xf32>
    %c138 = arith.constant 138 : index
    %c0_15 = arith.constant 0 : index
    %16 = vector.load %arg3[%c138, %c0_15] : memref<144x128xf32, #tpu.memory_space<vmem>>, vector<1x32xf32>
    %cst_16 = arith.constant dense<0.000000e+00> : vector<16x32xf32>
    %17 = tpu.matmul %1, %10, %cst_16 {dimension_numbers = #tpu.dot_dimension_numbers<[1], [0], [0], [1], [0, 0, 1, 1], [], []>} : vector<16x8xf32>, vector<8x32xf32>, vector<16x32xf32> -> vector<16x32xf32>
    %18 = arith.addf %17, %11 : vector<16x32xf32>
    %cst_17 = arith.constant 0.000000e+00 : f32
    %19 = vector.broadcast %cst_17 : f32 to vector<16x32xf32>
    %20 = arith.maximumf %18, %19 : vector<16x32xf32>
    %cst_18 = arith.constant dense<0.000000e+00> : vector<8x32xf32>
    %21 = tpu.matmul %3, %20, %cst_18 {dimension_numbers = #tpu.dot_dimension_numbers<[0], [0], [1], [1], [0, 1, 1, 1], [], []>} : vector<16x8xf32>, vector<16x32xf32>, vector<8x32xf32> -> vector<8x32xf32>
    %cst_19 = arith.constant 1.000000e+00 : f32
    %22 = arith.addf %cst_19, %12 : f32
    %23 = vector.broadcast %22 : f32 to vector<8x32xf32>
    %24 = arith.mulf %23, %10 : vector<8x32xf32>
    %25 = arith.addf %24, %21 : vector<8x32xf32>
    %cst_20 = arith.constant dense<0.000000e+00> : vector<8x64xf32>
    %26 = tpu.matmul %25, %13, %cst_20 {dimension_numbers = #tpu.dot_dimension_numbers<[1], [0], [0], [1], [0, 0, 1, 1], [], []>} : vector<8x32xf32>, vector<32x64xf32>, vector<8x64xf32> -> vector<8x64xf32>
    %27 = vector.broadcast %14 : vector<1x64xf32> to vector<8x64xf32>
    %28 = arith.addf %26, %27 : vector<8x64xf32>
    %cst_21 = arith.constant 0.000000e+00 : f32
    %29 = vector.broadcast %cst_21 : f32 to vector<8x64xf32>
    %30 = arith.maximumf %28, %29 : vector<8x64xf32>
    %cst_22 = arith.constant dense<0.000000e+00> : vector<8x32xf32>
    %31 = tpu.matmul %30, %15, %cst_22 {dimension_numbers = #tpu.dot_dimension_numbers<[1], [0], [0], [1], [0, 0, 1, 1], [], []>} : vector<8x64xf32>, vector<64x32xf32>, vector<8x32xf32> -> vector<8x32xf32>
    %32 = vector.broadcast %16 : vector<1x32xf32> to vector<8x32xf32>
    %33 = arith.addf %31, %32 : vector<8x32xf32>
    %cst_23 = arith.constant 0.000000e+00 : f32
    %34 = vector.broadcast %cst_23 : f32 to vector<8x32xf32>
    %35 = arith.cmpf ogt, %33, %34 : vector<8x32xf32>
    %cst_24 = arith.constant 1.000000e-01 : f32
    %36 = vector.broadcast %cst_24 : f32 to vector<8x32xf32>
    %37 = arith.mulf %36, %33 : vector<8x32xf32>
    %38 = arith.select %35, %33, %37 : vector<8x32xi1>, vector<8x32xf32>
    %39 = vector.extract_strided_slice %9 {offsets = [0, 32], sizes = [16, 32], strides = [1, 1]} : vector<16x64xf32> to vector<16x32xf32>
    %c1_25 = arith.constant 1 : index
    %40 = memref.load %arg4[%c1_25] : memref<2xf32, #tpu.memory_space<smem>>
    %c8_26 = arith.constant 8 : index
    %c64 = arith.constant 64 : index
    %41 = vector.load %arg3[%c8_26, %c64] : memref<144x128xf32, #tpu.memory_space<vmem>>, vector<32x64xf32>
    %c137_27 = arith.constant 137 : index
    %c64_28 = arith.constant 64 : index
    %42 = vector.load %arg3[%c137_27, %c64_28] : memref<144x128xf32, #tpu.memory_space<vmem>>, vector<1x64xf32>
    %c40_29 = arith.constant 40 : index
    %c32 = arith.constant 32 : index
    %43 = vector.load %arg3[%c40_29, %c32] : memref<144x128xf32, #tpu.memory_space<vmem>>, vector<64x32xf32>
    %c138_30 = arith.constant 138 : index
    %c32_31 = arith.constant 32 : index
    %44 = vector.load %arg3[%c138_30, %c32_31] : memref<144x128xf32, #tpu.memory_space<vmem>>, vector<1x32xf32>
    %cst_32 = arith.constant dense<0.000000e+00> : vector<16x32xf32>
    %45 = tpu.matmul %1, %38, %cst_32 {dimension_numbers = #tpu.dot_dimension_numbers<[1], [0], [0], [1], [0, 0, 1, 1], [], []>} : vector<16x8xf32>, vector<8x32xf32>, vector<16x32xf32> -> vector<16x32xf32>
    %46 = arith.addf %45, %39 : vector<16x32xf32>
    %cst_33 = arith.constant 0.000000e+00 : f32
    %47 = vector.broadcast %cst_33 : f32 to vector<16x32xf32>
    %48 = arith.maximumf %46, %47 : vector<16x32xf32>
    %cst_34 = arith.constant dense<0.000000e+00> : vector<8x32xf32>
    %49 = tpu.matmul %3, %48, %cst_34 {dimension_numbers = #tpu.dot_dimension_numbers<[0], [0], [1], [1], [0, 1, 1, 1], [], []>} : vector<16x8xf32>, vector<16x32xf32>, vector<8x32xf32> -> vector<8x32xf32>
    %cst_35 = arith.constant 1.000000e+00 : f32
    %50 = arith.addf %cst_35, %40 : f32
    %51 = vector.broadcast %50 : f32 to vector<8x32xf32>
    %52 = arith.mulf %51, %38 : vector<8x32xf32>
    %53 = arith.addf %52, %49 : vector<8x32xf32>
    %cst_36 = arith.constant dense<0.000000e+00> : vector<8x64xf32>
    %54 = tpu.matmul %53, %41, %cst_36 {dimension_numbers = #tpu.dot_dimension_numbers<[1], [0], [0], [1], [0, 0, 1, 1], [], []>} : vector<8x32xf32>, vector<32x64xf32>, vector<8x64xf32> -> vector<8x64xf32>
    %55 = vector.broadcast %42 : vector<1x64xf32> to vector<8x64xf32>
    %56 = arith.addf %54, %55 : vector<8x64xf32>
    %cst_37 = arith.constant 0.000000e+00 : f32
    %57 = vector.broadcast %cst_37 : f32 to vector<8x64xf32>
    %58 = arith.maximumf %56, %57 : vector<8x64xf32>
    %cst_38 = arith.constant dense<0.000000e+00> : vector<8x32xf32>
    %59 = tpu.matmul %58, %43, %cst_38 {dimension_numbers = #tpu.dot_dimension_numbers<[1], [0], [0], [1], [0, 0, 1, 1], [], []>} : vector<8x64xf32>, vector<64x32xf32>, vector<8x32xf32> -> vector<8x32xf32>
    %60 = vector.broadcast %44 : vector<1x32xf32> to vector<8x32xf32>
    %61 = arith.addf %59, %60 : vector<8x32xf32>
    %cst_39 = arith.constant 0.000000e+00 : f32
    %62 = vector.broadcast %cst_39 : f32 to vector<8x32xf32>
    %63 = arith.cmpf ogt, %61, %62 : vector<8x32xf32>
    %cst_40 = arith.constant 1.000000e-01 : f32
    %64 = vector.broadcast %cst_40 : f32 to vector<8x32xf32>
    %65 = arith.mulf %64, %61 : vector<8x32xf32>
    %66 = arith.select %63, %61, %65 : vector<8x32xi1>, vector<8x32xf32>
    %c104 = arith.constant 104 : index
    %c0_41 = arith.constant 0 : index
    %67 = vector.load %arg3[%c104, %c0_41] : memref<144x128xf32, #tpu.memory_space<vmem>>, vector<32x128xf32>
    %c139 = arith.constant 139 : index
    %c0_42 = arith.constant 0 : index
    %68 = vector.load %arg3[%c139, %c0_42] : memref<144x128xf32, #tpu.memory_space<vmem>>, vector<1x128xf32>
    %cst_43 = arith.constant dense<0.000000e+00> : vector<8x128xf32>
    %69 = tpu.matmul %66, %67, %cst_43 {dimension_numbers = #tpu.dot_dimension_numbers<[1], [0], [0], [1], [0, 0, 1, 1], [], []>} : vector<8x32xf32>, vector<32x128xf32>, vector<8x128xf32> -> vector<8x128xf32>
    %70 = vector.broadcast %68 : vector<1x128xf32> to vector<8x128xf32>
    %71 = arith.addf %69, %70 : vector<8x128xf32>
    %c0_44 = arith.constant 0 : index
    %c0_45 = arith.constant 0 : index
    %72 = vector.load %arg5[%c0_44, %c0_45] : memref<8x128xf32, #tpu.memory_space<vmem>>, vector<8x128xf32>
    tpu.vector_store %arg5[%c0_44, %c0_45], %71 {strides = array<i32>} : memref<8x128xf32, #tpu.memory_space<vmem>>, vector<8x128xf32>,
    return
  }
}

</mosaic_0001>

<bundles_post_ra>
// kernel: vgae_encoder_forward.1
= control target key start
LH: loop header
LB: loop body
LE: loop exit
PB: predicated region body
PF: predicated region fallthrough
CT: control target
= control target key end

     0   :  { %10 = vsyncpa [#allocation3], 0  ;;  %s1443_s0 = inlined_call_operand.vmem [shape: f32[8,32], index: 0, kind: input, shape index: {}]   ;;  %s1444_s1 = inlined_call_operand.vmem [shape: f32[16,4], index: 1, kind: input, shape index: {}]   ;;  %s1445_s2 = inlined_call_operand.vmem [shape: f32[2,16,8], index: 2, kind: input, shape index: {}]   ;;  %s1446_s3 = inlined_call_operand.hbm [shape: f32[144,128], index: 3, kind: input, shape index: {}]   ;;  %s1447_s4 = inlined_call_operand.vmem [shape: f32[2], index: 4, kind: input, shape index: {}]   ;;  %s1448_s5 = inlined_call_operand.vmem [shape: f32[8,128], index: 5, kind: output, shape index: {}]  }
   0x1   :  { %11 = vsyncpa [#allocation4], 0  ;;  %s1265_s18 = smov [#allocation2]   ;;  %s36_s22 = sshll.u32 %s1447_s4, 4  ;;  %s37_s22 = int_to_ptr.vmem [resolvable:$true] %s36_s22 }
   0x2   :  { %s23_s19 = sshll.u32 %s1265_s18, 4  ;;  %s1227_s25 = scalar_lea.hbm %s1446_s3, 2304  ;;  %s24_s19 = int_to_ptr.vmem [resolvable:$true] %s23_s19 }
   0x3   :  { %p1228_p0 = scmp.ne.s32.totalorder %s1446_s3, %s1227_s25  ;;  %p1231_p1 = scmp.lt.u32.totalorder %s1227_s25, %s1446_s3 }
   0x5   :  { %p1233_p2 = pnand %p1231_p1, %p1228_p0 }
   0x7   :  { %1236 = shalt.err (!%p1233_p2)
}
   0x8   :  { %s1237_s30 = scalar_lea.vmem %s24_s19, 2304  ;;  %p1242_p4 = scmp.lt.s32.totalorder %s24_s19, %s24_s19 }
   0x9   :  { %p1238_p3 = scmp.ne.s32.totalorder %s24_s19, %s1237_s30  ;;  %p1243_p5 = scmp.lt.s32.totalorder %s1237_s30, %s1237_s30 }
   0xb   :  { %p1244_p6 = por %p1243_p5, %p1242_p4 }
   0xd   :  { %p1245_p7 = pnand %p1244_p6, %p1238_p3 }
   0xf   :  { %1248 = shalt.err (!%p1245_p7)
}
  0x10   :  { %s1266_s4 = smov 128   ;;  %s1267_s6 = smov 8  }
  0x11   :  { %29 = dma.hbm_to_vmem [thread:$0]  %s1446_s3, 2304, %s24_s19, [#allocation3], %s1266_s4, %s1266_s4, %s1267_s6  }
  0x12   :  { %s1249_s9 = scalar_lea.vmem %s37_s22, 16  ;;  %p1254_p9 = scmp.lt.s32.totalorder %s37_s22, %s37_s22 }
  0x13   :  { %p1250_p8 = scmp.ne.s32.totalorder %s37_s22, %s1249_s9  ;;  %p1255_p10 = scmp.lt.s32.totalorder %s1249_s9, %s1249_s9 }
  0x15   :  { %p1256_p11 = por %p1255_p10, %p1254_p9 }
  0x17   :  { %p1257_p12 = pnand %p1256_p11, %p1250_p8 }
  0x19   :  { %1260 = shalt.err (!%p1257_p12)
}
  0x1a   :  { %s1268_s10 = smov [#allocation5]  }
  0x1b   :  { %39 = dma.vmem_to_smem %s37_s22, 16, %s1268_s10, [#allocation4]  }
  0x1c   :  { %1261 = dma.done.wait [#allocation3], 2304  }
  0x1d   :  { %1262 = vsyncadd [#allocation3], 4294964992 }
  0x1e   :  { %1263 = dma.done.wait [#allocation4], 16  }
  0x1f   :  { %1264 = vsyncadd [#allocation4], 4294967280 }
  0x20   :  { %46 = sfence }
  0x21   :  { %v54_v0 = vld [vmem:[#allocation2] sm:$0xf]  ;;  %vm67_vm0 = vcmask 1043456   ;;  %vm60_vm1 = vcmask 31744   ;;  %v53_v3 = vld [vmem:[%s1444_s1 + $0x8] sm:$0xff]  ;;  %vm162_vm2 = vcmask 64512  }
  0x22   :  { %v52_v1 = vld [vmem:[%s1444_s1] sm:$0xff]  ;;  %1040 = vmatprep.subr.msk.mxu0 %vm67_vm0, %v54_v0  ;;  %v1339_v5 = vld [vmem:[%s1445_s2 + $0x8] sm:$0xff]  ;;  %v971_v6 = vld [vmem:[%s1445_s2 + $0x10] sm:$0xff]  ;;  %v1269_v8 = vmov 0.0|0.0   ;;  %vm1270_vm3 = vmmov 0   ;;  %v1271_v9 = vmov 0.0  }
  0x23   :  { %v1325_v2 = vld [vmem:[%s1443_s0] sm:$0xff]  ;;  %1042 = vmatprep.mubr.msk.f32.mxu0 %vm60_vm1, %v52_v1  ;;  %1041 = vmatpush3.msk.msra.mxu0 %vm67_vm0, %v54_v0  ;;  %v972_v7 = vld [vmem:[%s1445_s2 + $0x18] sm:$0xff]  ;;  %v1358_v10 = vld [vmem:[#allocation2 + $0x8] sm:$0xff]  ;;  %vm278_vm4 = vcmask 130048   ;;  %s147_s22 = sld [smem:[#allocation5]]  ;;  %vm360_vm5 = vcmask 261120  }
  0x24   :  { %v1333_v4 = vld [vmem:[%s1445_s2] sm:$0xff]  ;;  %1045 = vmatprep.subr.mxu1 %v1325_v2  ;;  %1043 = vmatmul.mubr.msk.f32.vlgmr.msra.gmra.mrb[0].mxu0 %vm60_vm1, %v53_v3  ;;  %v1360_v11 = vld [vmem:[#allocation2 + $0x10] sm:$0xff]  ;;  %v973_v13 = vld [vmem:[#allocation2 + $0x88] ss:$0 sm:$0xff]  ;;  %s1272_s2 = smov 96   ;;  %vm439_vm6 = vcmask 523264  }
  0x25   :  { %1046 = vmatpush3.msra.mxu1 %v1325_v2  ;;  %1047 = vmatprep.mubr.msk.f32.mxu1 %vm162_vm2, %v1333_v4  ;;  %v1144_v12 = vpack.c.bf16 %v1360_v11, %v1358_v10  ;;  %v150_v26 = vld [vmem:[#allocation2 + $0x18] sm:$0xff]  ;;  %v151_v27 = vld [vmem:[#allocation2 + $0x20] sm:$0xff]  ;;  %v1374_v29 = vld [vmem:[#allocation2 + $0x28] sm:$0xff]  ;;  %v1197_v57 = vpack.i.bf16 %v1360_v11, %v1358_v10  ;;  %s1273_s24 = smov 64   ;;  %s984_s25 = sld [smem:[#allocation5 + $0x1]] }
  0x26   :  { %246 = vxpose.xlu0.b32.start [1/2] (short) (narrow) %v971_v6, 8  ;;  %1048 = vmatmul.mubr.msk.f32.vlgmr.msra.gmra.mrb[0].mxu1 %vm162_vm2, %v1339_v5  ;;  %v1147_v28 = vpack.c.bf16 %v151_v27, %v150_v26  ;;  %v1376_v30 = vld [vmem:[#allocation2 + $0x30] sm:$0xff]  ;;  %v1378_v31 = vld [vmem:[#allocation2 + $0x38] sm:$0xff]  ;;  %v1382_v33 = vld [vmem:[#allocation2 + $0x40] sm:$0xff]  ;;  %v1202_v58 = vpack.i.bf16 %v151_v27, %v150_v26 }
  0x27   :  { %1140 = vmatprep.subr.bf16.mxu0 %v1269_v8  ;;  %1143 = vmatprep.subr.bf16.mxu1 %v1269_v8  ;;  %v1150_v32 = vpack.c.bf16 %v1376_v30, %v1374_v29  ;;  %v1153_v34 = vpack.c.bf16 %v1382_v33, %v1378_v31  ;;  %v1387_v35 = vld [vmem:[#allocation2 + $0x48] sm:$0xff]  ;;  %v1389_v36 = vld [vmem:[#allocation2 + $0x50] sm:$0xff]  ;;  %v159_v43 = vld [vmem:[#allocation2 + $0x58] sm:$0xff] }
  0x28   :  { %1054 = vmatprep.mubr.msk.f32.mxu0 %vm1270_vm3, %v1271_v9  ;;  %1065 = vmatprep.mubr.msk.f32.mxu1 %vm1270_vm3, %v1271_v9  ;;  %v1156_v37 = vpack.c.bf16 %v1389_v36, %v1387_v35  ;;  %v160_v44 = vld [vmem:[#allocation2 + $0x60] sm:$0xff]  ;;  %v980_v46 = vld [vmem:[#allocation2 + $0x89] ss:$0 sm:$0xff]  ;;  %v982_v51 = vld [vmem:[#allocation2 + $0x8a] ss:$0 sm:$0xff] }
  0x29   :  { %1145 = vmatpush3.bf16.msra.mxu1 %v1144_v12  ;;  %s352_s23 = sadd.f32 1.0, %s147_s22  ;;  %v1159_v45 = vpack.c.bf16 %v160_v44, %v159_v43 }
  0x2a   :  { %247 = vxpose.xlu0.b32.end [2/2] (short) (narrow) %v972_v7, 8  ;;  %1146 = vmatprep.subr.bf16.mxu1 %v1269_v8 }
  0x2b   :  { %v353_v38 = vstv %s352_s23  ;;  %s672_s26 = sadd.f32 1.0, %s984_s25 }
  0x2c   :  { %v354_v39 = vmul.f32 %v353_v38, %v1325_v2 }
  0x2d   :  { %1148 = vmatpush3.bf16.msra.mxu1 %v1147_v28 }
  0x53   :  { %1198 = vrot.lane.b32.xlu0 %v1197_v57, %s1273_s24 }
  0xa6   :  { %v1367_v25 = vpop.trf.xlu0 }
  0xc5   :  { %v1199_v0 = vpop.permute.xlu0 %1198 }
  0xf7   :  { %v1044_v14 = vpop.f32.mrb[0].mxu0 }
  0xf8   :  { %v143_v15 = vadd.f32 %v1044_v14, %v973_v13  ;;  %v137_v16 = vpop.f32.mrb[1].mxu0  ;;  %v1207_v14 = vpack.i.bf16 %v1376_v30, %v1374_v29 }
  0xf9   :  { %v138_v17 = vadd.f32 %v973_v13, %v137_v16  ;;  %v1049_v18 = vpop.f32.mrb[0].mxu1  ;;  %v1217_v16 = vpack.i.bf16 %v1389_v36, %v1387_v35 }
  0xfa   :  { %v241_v19 = vadd.f32 %v1049_v18, %v143_v15  ;;  %v235_v20 = vpop.f32.mrb[1].mxu1 }
  0xfb   :  { %v236_v21 = vadd.f32 %v235_v20, %v138_v17  ;;  %519 = vrot.lane.b32.xlu1 %v138_v17, %s1272_s2  ;;  %v1222_v17 = vpack.i.bf16 %v160_v44, %v159_v43 }
  0xfc   :  { %v245_v22 = vmax.f32 %v241_v19, 0.0 }
  0xfd   :  { %v244_v23 = vmax.f32 %v236_v21, 0.0 }
  0xff   :  { %v1141_v24 = vpack.c.bf16 %v245_v22, %v244_v23  ;;  %521 = vrot.lane.b32.xlu1 %v143_v15, %s1272_s2  ;;  %v1212_v15 = vpack.i.bf16 %v1382_v33, %v1378_v31  ;;  %v673_v23 = vstv %s672_s26 }
 0x101   :  { %1142 = vmatpush3.bf16.msra.mxu0 %v1141_v24 }
 0x102   :  { %1149 = vmatprep.subr.bf16.mxu0 %v1269_v8 }
 0x103   :  { %1203 = vrot.lane.b32.xlu1 %v1202_v58, %s1273_s24 }
 0x104   :  { %1055 = vmatmul.mubr.msk.f32.vlgmr.msra.gmra.mrb[2].mxu0 %vm278_vm4, %v1367_v25 }
 0x105   :  { %1084 = vmatprep.mubr.msk.f32.mxu0 %vm1270_vm3, %v1271_v9  ;;  %1151 = vmatpush3.bf16.msra.mxu0 %v1150_v32 }
 0x106   :  { %1152 = vmatprep.subr.bf16.mxu0 %v1269_v8 }
 0x107   :  { %1208 = vrot.lane.b32.xlu1 %v1207_v14, %s1272_s2 }
 0x109   :  { %1154 = vmatpush3.bf16.msra.mxu0 %v1153_v34 }
 0x10a   :  { %1155 = vmatprep.subr.bf16.mxu0 %v1269_v8 }
 0x10b   :  { %1213 = vrot.lane.b32.xlu1 %v1212_v15, %s1272_s2 }
 0x10d   :  { %1157 = vmatpush3.bf16.msra.mxu0 %v1156_v37 }
 0x10e   :  { %1158 = vmatprep.subr.bf16.mxu0 %v1269_v8 }
 0x10f   :  { %1218 = vrot.lane.b32.xlu1 %v1217_v16, %s1272_s2 }
 0x111   :  { %1160 = vmatpush3.bf16.msra.mxu0 %v1159_v45 }
 0x112   :  { %1170 = vmatprep.subr.bf16.mxu0 %v1269_v8 }
 0x113   :  { %1223 = vrot.lane.b32.xlu1 %v1222_v17, %s1272_s2 }
 0x117   :  { %693 = vrot.lane.b32.xlu1 %v980_v46, %s1273_s24 }
 0x11b   :  { %803 = vrot.lane.b32.xlu1 %v982_v51, %s1272_s2 }
 0x16d   :  { %v520_v59 = vpop.permute.xlu1 %519 }
 0x171   :  { %v522_v60 = vpop.permute.xlu1 %521 }
 0x175   :  { %v1204_v6 = vpop.permute.xlu1 %1203 }
 0x176   :  { %v1206_v11 = vunpack.i.h.bf16 %v1204_v6  ;;  %v1205_v12 = vunpack.i.l.bf16 %v1204_v6 }
 0x178   :  { %v1168_v13 = vpack.c.bf16 %v1206_v11, %v1205_v12 }
 0x179   :  { %v1209_v18 = vpop.permute.xlu1 %1208 }
 0x17a   :  { %v1211_v19 = vunpack.i.h.bf16 %v1209_v18  ;;  %v1210_v20 = vunpack.i.l.bf16 %v1209_v18 }
 0x17c   :  { %v1171_v21 = vpack.c.bf16 %v1211_v19, %v1210_v20 }
 0x17d   :  { %v1214_v22 = vpop.permute.xlu1 %1213 }
 0x17e   :  { %v1216_v24 = vunpack.i.h.bf16 %v1214_v22 }
 0x181   :  { %v1219_v28 = vpop.permute.xlu1 %1218 }
 0x182   :  { %v1221_v30 = vunpack.i.h.bf16 %v1219_v28  ;;  %v1220_v31 = vunpack.i.l.bf16 %v1219_v28 }
 0x184   :  { %v1177_v34 = vpack.c.bf16 %v1221_v30, %v1220_v31 }
 0x185   :  { %v1224_v35 = vpop.permute.xlu1 %1223 }
 0x186   :  { %v1226_v36 = vunpack.i.h.bf16 %v1224_v35  ;;  %v1225_v37 = vunpack.i.l.bf16 %v1224_v35 }
 0x188   :  { %v1180_v38 = vpack.c.bf16 %v1226_v36, %v1225_v37 }
 0x1d7   :  { %v348_v40 = vpop.f32.mrb[2].mxu0 }
 0x1d8   :  { %v355_v41 = vadd.f32 %v354_v39, %v348_v40  ;;  %v1056_v42 = vpop.f32.mrb[3].mxu0  ;;  %v882_v39 = vld [vmem:[#allocation2 + $0x68] sm:$0xff]  ;;  %v883_v40 = vld [vmem:[#allocation2 + $0x70] sm:$0xff] }
 0x1d9   :  { %v694_v42 = vpop.permute.xlu1 %693 }
 0x1da   :  { %1066 = vmatmul.mubr.msk.f32.vlgmr.msra.gmra.mrb[2].mxu1 %vm360_vm5, %v355_v41  ;;  %v1183_v41 = vpack.c.bf16 %v883_v40, %v882_v39 }
 0x1db   :  { %1089 = vmatprep.mubr.msk.f32.mxu1 %vm162_vm2, %v1333_v4  ;;  %v1201_v4 = vunpack.i.h.bf16 %v1199_v0 }
 0x2ad   :  { %v430_v47 = vpop.f32.mrb[2].mxu1 }
 0x2ae   :  { %v431_v48 = vadd.f32 %v980_v46, %v430_v47  ;;  %v1067_v49 = vpop.f32.mrb[3].mxu1  ;;  %v884_v47 = vld [vmem:[#allocation2 + $0x78] sm:$0xff] }
 0x2af   :  { %v804_v49 = vpop.permute.xlu1 %803 }
 0x2b0   :  { %v434_v50 = vmax.f32 %v431_v48, 0.0  ;;  %v885_v48 = vld [vmem:[#allocation2 + $0x80] sm:$0xff] }
 0x2b2   :  { %1085 = vmatmul.mubr.msk.f32.vlgmr.msra.gmra.mrb[4].mxu0 %vm439_vm6, %v434_v50 }
 0x2b3   :  { %1126 = vmatprep.mubr.msk.f32.mxu0 %vm1270_vm3, %v1271_v9  ;;  %1172 = vmatpush3.bf16.msra.mxu0 %v1171_v21 }
 0x2b4   :  { %1173 = vmatprep.subr.bf16.mxu0 %v1269_v8 }
 0x385   :  { %v509_v52 = vpop.f32.mrb[4].mxu0 }
 0x386   :  { %v510_v53 = vadd.f32 %v982_v51, %v509_v52  ;;  %v1086_v54 = vpop.f32.mrb[5].mxu0 }
 0x388   :  { %v514_v55 = vmul.f32 0.1, %v510_v53  ;;  %vm513_vm7 = vcmp.gt.f32.partialorder %v510_v53, 0.0 }
 0x38a   :  { %v515_v56 = vsel %vm513_vm7, %v510_v53, %v514_v55 }
 0x38b   :  { %1087 = vmatprep.subr.mxu1 %v515_v56  ;;  %v674_v27 = vmul.f32 %v673_v23, %v515_v56 }
 0x38c   :  { %1088 = vmatpush3.msra.mxu1 %v515_v56 }
 0x38d   :  { %1090 = vmatmul.mubr.msk.f32.vlgmr.msra.gmra.mrb[4].mxu1 %vm162_vm2, %v1339_v5  ;;  %1161 = vmatprep.subr.bf16.mxu1 %v1269_v8  ;;  %v1200_v5 = vunpack.i.l.bf16 %v1199_v0 }
 0x38e   :  { %1096 = vmatprep.mubr.msk.f32.mxu1 %vm1270_vm3, %v1271_v9 }
 0x38f   :  { %v1165_v10 = vpack.c.bf16 %v1201_v4, %v1200_v5 }
 0x460   :  { %v1091_v61 = vpop.f32.mrb[4].mxu1 }
 0x461   :  { %v597_v62 = vadd.f32 %v1091_v61, %v522_v60  ;;  %v591_v63 = vpop.f32.mrb[5].mxu1 }
 0x462   :  { %v592_v1 = vadd.f32 %v591_v63, %v520_v59 }
 0x463   :  { %v601_v2 = vmax.f32 %v597_v62, 0.0 }
 0x464   :  { %v600_v3 = vmax.f32 %v592_v1, 0.0 }
 0x466   :  { %v1162_v7 = vpack.c.bf16 %v601_v2, %v600_v3 }
 0x468   :  { %1163 = vmatpush3.bf16.msra.mxu1 %v1162_v7 }
 0x469   :  { %1164 = vmatprep.subr.bf16.mxu1 %v1269_v8 }
 0x46b   :  { %1097 = vmatmul.mubr.msk.f32.vlgmr.msra.gmra.mrb[6].mxu1 %vm278_vm4, %v1367_v25  ;;  %v1215_v25 = vunpack.i.l.bf16 %v1214_v22 }
 0x46c   :  { %1166 = vmatpush3.bf16.msra.mxu1 %v1165_v10  ;;  %1107 = vmatprep.mubr.msk.f32.mxu1 %vm1270_vm3, %v1271_v9 }
 0x46d   :  { %1167 = vmatprep.subr.bf16.mxu1 %v1269_v8  ;;  %v1174_v26 = vpack.c.bf16 %v1216_v24, %v1215_v25 }
 0x46f   :  { %1175 = vmatpush3.bf16.msra.mxu0 %v1174_v26 }
 0x470   :  { %1169 = vmatpush3.bf16.msra.mxu1 %v1168_v13  ;;  %1176 = vmatprep.subr.bf16.mxu0 %v1269_v8 }
 0x471   :  { %1182 = vmatprep.subr.bf16.mxu1 %v1269_v8 }
 0x473   :  { %1178 = vmatpush3.bf16.msra.mxu0 %v1177_v34 }
 0x474   :  { %1179 = vmatprep.subr.bf16.mxu0 %v1269_v8 }
 0x477   :  { %1181 = vmatpush3.bf16.msra.mxu0 %v1180_v38 }
 0x53e   :  { %v668_v29 = vpop.f32.mrb[6].mxu1 }
 0x53f   :  { %v675_v32 = vadd.f32 %v674_v27, %v668_v29  ;;  %v1098_v33 = vpop.f32.mrb[7].mxu1 }
 0x541   :  { %1108 = vmatmul.mubr.msk.f32.vlgmr.msra.gmra.mrb[8].mxu1 %vm360_vm5, %v675_v32 }
 0x542   :  { %1137 = vmatprep.mubr.msk.f32.mxu1 %vm1270_vm3, %v1271_v9  ;;  %1184 = vmatpush3.bf16.msra.mxu1 %v1183_v41  ;;  %v1186_v9 = vpack.c.bf16 %v885_v48, %v884_v47 }
 0x543   :  { %1185 = vmatprep.subr.bf16.mxu1 %v1269_v8  ;;  %v990_v8 = vld [vmem:[#allocation2 + $0x8b] ss:$0 sm:$0xff] }
 0x546   :  { %1187 = vmatpush3.bf16.msra.mxu1 %v1186_v9 }
 0x614   :  { %v765_v43 = vpop.f32.mrb[8].mxu1 }
 0x615   :  { %v766_v44 = vadd.f32 %v765_v43, %v694_v42  ;;  %v1109_v45 = vpop.f32.mrb[9].mxu1 }
 0x617   :  { %v769_v46 = vmax.f32 %v766_v44, 0.0 }
 0x619   :  { %1127 = vmatmul.mubr.msk.f32.vlgmr.msra.gmra.mrb[6].mxu0 %vm439_vm6, %v769_v46 }
 0x6ec   :  { %v875_v50 = vpop.f32.mrb[6].mxu0 }
 0x6ed   :  { %v876_v51 = vadd.f32 %v875_v50, %v804_v49  ;;  %v1128_v52 = vpop.f32.mrb[7].mxu0 }
 0x6ef   :  { %vm879_vm8 = vcmp.gt.f32.partialorder %v876_v51, 0.0  ;;  %v880_v53 = vmul.f32 0.1, %v876_v51 }
 0x6f1   :  { %v881_v54 = vsel %vm879_vm8, %v876_v51, %v880_v53 }
 0x6f2   :  { %1138 = vmatmul.mubr.msk.f32.vlgmr.msra.gmra.mrb[10].mxu1 %vm360_vm5, %v881_v54 }
 0x7c5   :  { %v960_v55 = vpop.f32.mrb[10].mxu1 }
 0x7c6   :  { %v961_v56 = vadd.f32 %v990_v8, %v960_v55  ;;  %v1139_v57 = vpop.f32.mrb[11].mxu1 }
 0x7c8   :  { %964 = vst [vmem:[%s1448_s5] sm:$0xff] %v961_v56 }
 0x7c9   :  { %969 = vsyncpa [#allocation3], 1 }
 0x7ca   :  { %970 = vsyncpa [#allocation4], 1 }

</bundles_post_ra>
